<compile_context>
chip_gen: v6e
topology: v6e:2x2x1
jax: 0.10.0
libtpu: 0.0.40
codegen_flags: <defaults>
</compile_context>

<pallas_src>
import functools

import jax
import jax.numpy as jnp
from jax.experimental import pallas as pl
from jax.experimental.pallas import tpu as pltpu


def _round_up(n, m):
    return ((n + m - 1) // m) * m


def _mlp_kernel(x_ref, w1_ref, b1_ref, w2_ref, b2_ref, o_ref):
    # fc1: MXU matmul with f32 accumulation; bias + ReLU epilogue in f32 (VPU).
    h = jnp.dot(x_ref[...], w1_ref[...], preferred_element_type=jnp.float32)
    h = jnp.maximum(h + b1_ref[...], 0.0)            # (tb, Hp) + (1, Hp) broadcast
    # fc2: cast activation to the weight dtype (no-op when weights are f32).
    y = jnp.dot(h.astype(w2_ref.dtype), w2_ref[...],
                preferred_element_type=jnp.float32)
    y = y + b2_ref[...]                              # (tb, Op) + (1, Op) broadcast
    o_ref[...] = jax.nn.sigmoid(y).astype(o_ref.dtype)


@functools.partial(jax.jit, static_argnames=("out_dim", "max_batch_tile"))
def _simple_nn_forward(x, w1_p, b1_p, w2_p, b2_p, *, out_dim, max_batch_tile):
    B, D_in = x.shape
    D_in_p, H_p = w1_p.shape
    D_out_p = w2_p.shape[1]
    compute_dtype = w1_p.dtype

    # Batch tiling: never inflate a small batch.  Tile rows stay a multiple of
    # 16 (covers bf16 sublane packing and f32's 8-row tile); the grid has >1
    # step only when there are more real rows than one tile, so on v7x both
    # TensorCores only ever get non-padding work.
    batch_tile = min(max_batch_tile, _round_up(B, 16))
    n_tiles = pl.cdiv(B, batch_tile)
    B_p = n_tiles * batch_tile

    # Lane-dense x padding (fuses with neighbors under jit).
    x_p = jnp.zeros((B_p, D_in_p), compute_dtype).at[:B, :D_in].set(
        x.astype(compute_dtype))

    out_p = pl.pallas_call(
        _mlp_kernel,
        out_shape=jax.ShapeDtypeStruct((B_p, D_out_p), jnp.float32),
        grid_spec=pltpu.PrefetchScalarGridSpec(
            num_scalar_prefetch=0,
            grid=(n_tiles,),
            in_specs=[
                # x: one batch tile per grid step.
                pl.BlockSpec((batch_tile, D_in_p), lambda i: (i, 0)),
                # Constant-index resident operands: single-buffered.
                pl.BlockSpec((D_in_p, H_p), lambda i: (0, 0),
                             pipeline_mode=pl.Buffered(1)),
                pl.BlockSpec((1, H_p), lambda i: (0, 0),
                             pipeline_mode=pl.Buffered(1)),
                pl.BlockSpec((H_p, D_out_p), lambda i: (0, 0),
                             pipeline_mode=pl.Buffered(1)),
                pl.BlockSpec((1, D_out_p), lambda i: (0, 0),
                             pipeline_mode=pl.Buffered(1)),
            ],
            out_specs=pl.BlockSpec((batch_tile, D_out_p), lambda i: (i, 0)),
        ),
        compiler_params=pltpu.CompilerParams(
            dimension_semantics=("parallel",),
        ),
    )(x_p, w1_p, b1_p, w2_p, b2_p)

    # Padded rows hold nonzero garbage (sigmoid(relu(b1) @ w2 + b2)); padded
    # output columns are sigmoid(0)=0.5.  Both are sliced off here.
    # TODO(synk): drop this slice if the consumer accepts a padded
    # (B_p, D_out_p) output and masks/ignores the extra rows/cols.
    return out_p[:B, :out_dim]


class SimpleNNPallas:
    """SimpleNN forward; weights padded / cast once at construction."""

    def __init__(self, w1, b1, w2, b2, *, compute_dtype=jnp.float32,
                 max_batch_tile=128):
        # max_batch_tile: 128 is a safe default everywhere (fills v5e's 4x128^2
        # MXU, modest f32 writeback).  Raise to 256-512 on v6e/v7x only if the
        # real batch grows to >=512 rows.
        D_in, H = w1.shape
        D_out = w2.shape[1]
        D_in_p = _round_up(D_in, 128)
        H_p = _round_up(H, 128)
        D_out_p = _round_up(D_out, 128)

        f32 = jnp.float32
        self._w1_p = jnp.zeros((D_in_p, H_p), compute_dtype).at[:D_in, :H].set(
            w1.astype(compute_dtype))
        self._w2_p = jnp.zeros((H_p, D_out_p), compute_dtype).at[:H, :D_out].set(
            w2.astype(compute_dtype))
        self._b1_p = jnp.zeros((1, H_p), f32).at[0, :H].set(b1.astype(f32))
        self._b2_p = jnp.zeros((1, D_out_p), f32).at[0, :D_out].set(b2.astype(f32))
        self._out_dim = D_out
        self._max_batch_tile = int(max_batch_tile)

    def __call__(self, x):
        return _simple_nn_forward(
            x, self._w1_p, self._b1_p, self._w2_p, self._b2_p,
            out_dim=self._out_dim, max_batch_tile=self._max_batch_tile)


if __name__ == "__main__":
    # Small shapes consistent with the module's forward.
    batch, input_dim, hidden_dim, output_dim = 16, 32, 64, 8

    key = jax.random.PRNGKey(0)
    kx, kw1, kb1, kw2, kb2, kx2 = jax.random.split(key, 6)

    # Deterministic synthetic parameters (PyTorch-style uniform fan-in init).
    bound1 = 1.0 / (input_dim ** 0.5)
    bound2 = 1.0 / (hidden_dim ** 0.5)
    x = jax.random.normal(kx, (batch, input_dim), dtype=jnp.float32)
    w1 = jax.random.uniform(kw1, (input_dim, hidden_dim), jnp.float32, -bound1, bound1)
    b1 = jax.random.uniform(kb1, (hidden_dim,), jnp.float32, -bound1, bound1)
    w2 = jax.random.uniform(kw2, (hidden_dim, output_dim), jnp.float32, -bound2, bound2)
    b2 = jax.random.uniform(kb2, (output_dim,), jnp.float32, -bound2, bound2)

    model = SimpleNNPallas(w1, b1, w2, b2)  # f32 compute: bit-parity with PyTorch

    def ref(xi):
        return jax.nn.sigmoid(jnp.maximum(xi @ w1 + b1, 0.0) @ w2 + b2)

    # Case 1: the real SimpleNN shape (B=16 -> single 16-row tile, 1 grid step).
    out = jax.block_until_ready(model(x))
    assert out.shape == (batch, output_dim)
    assert jnp.allclose(out, ref(x), atol=1e-4, rtol=1e-4)

    # Case 2: non-multiple batch exercising the multi-tile / padded-rows path
    # (B=200 -> two 128-row tiles, 56 padded rows sliced off).
    x2 = jax.random.normal(kx2, (200, input_dim), dtype=jnp.float32)
    out2 = jax.block_until_ready(model(x2))
    assert out2.shape == (200, output_dim)
    assert jnp.allclose(out2, ref(x2), atol=1e-4, rtol=1e-4)

    print("KERNEL_OK")
</pallas_src>

<mosaic_0001>
module attributes {stable_mosaic.version = 11 : i64} {
  func.func @_mlp_kernel(%arg0: i32, %arg1: memref<16x128xf32, #tpu.memory_space<vmem>>, %arg2: memref<128x128xf32, #tpu.memory_space<vmem>>, %arg3: memref<1x128xf32, #tpu.memory_space<vmem>>, %arg4: memref<128x128xf32, #tpu.memory_space<vmem>>, %arg5: memref<1x128xf32, #tpu.memory_space<vmem>>, %arg6: memref<16x128xf32, #tpu.memory_space<vmem>>) attributes {dimension_semantics = [#tpu.dimension_semantics<parallel>], iteration_bounds = array<i64: 1>, scalar_prefetch = 0 : i64, scratch_operands = 0 : i64, tpu.core_type = #tpu.core_type<tc>, window_params = [{transform_indices = @transform_0, window_bounds = array<i64: 16, 128>}, {pipeline_mode = #tpu.pipeline_mode<synchronous>, transform_indices = @transform_1, window_bounds = array<i64: 128, 128>}, {pipeline_mode = #tpu.pipeline_mode<synchronous>, transform_indices = @transform_2, window_bounds = array<i64: 1, 128>}, {pipeline_mode = #tpu.pipeline_mode<synchronous>, transform_indices = @transform_3, window_bounds = array<i64: 128, 128>}, {pipeline_mode = #tpu.pipeline_mode<synchronous>, transform_indices = @transform_4, window_bounds = array<i64: 1, 128>}, {transform_indices = @transform_5, window_bounds = array<i64: 16, 128>}]} {
    %c0 = arith.constant 0 : index
    %c0_0 = arith.constant 0 : index
    %0 = vector.load %arg1[%c0, %c0_0] : memref<16x128xf32, #tpu.memory_space<vmem>>, vector<16x128xf32>
    %c0_1 = arith.constant 0 : index
    %c0_2 = arith.constant 0 : index
    %1 = vector.load %arg2[%c0_1, %c0_2] : memref<128x128xf32, #tpu.memory_space<vmem>>, vector<128x128xf32>
    %cst = arith.constant dense<0.000000e+00> : vector<16x128xf32>
    %2 = tpu.matmul %0, %1, %cst {dimension_numbers = #tpu.dot_dimension_numbers<[1], [0], [0], [1], [0, 0, 1, 1], [], []>} : vector<16x128xf32>, vector<128x128xf32>, vector<16x128xf32> -> vector<16x128xf32>
    %c0_3 = arith.constant 0 : index
    %c0_4 = arith.constant 0 : index
    %3 = vector.load %arg3[%c0_3, %c0_4] : memref<1x128xf32, #tpu.memory_space<vmem>>, vector<1x128xf32>
    %4 = vector.broadcast %3 : vector<1x128xf32> to vector<16x128xf32>
    %5 = arith.addf %2, %4 : vector<16x128xf32>
    %cst_5 = arith.constant 0.000000e+00 : f32
    %6 = vector.broadcast %cst_5 : f32 to vector<16x128xf32>
    %7 = arith.maximumf %5, %6 : vector<16x128xf32>
    %c0_6 = arith.constant 0 : index
    %c0_7 = arith.constant 0 : index
    %8 = vector.load %arg4[%c0_6, %c0_7] : memref<128x128xf32, #tpu.memory_space<vmem>>, vector<128x128xf32>
    %cst_8 = arith.constant dense<0.000000e+00> : vector<16x128xf32>
    %9 = tpu.matmul %7, %8, %cst_8 {dimension_numbers = #tpu.dot_dimension_numbers<[1], [0], [0], [1], [0, 0, 1, 1], [], []>} : vector<16x128xf32>, vector<128x128xf32>, vector<16x128xf32> -> vector<16x128xf32>
    %c0_9 = arith.constant 0 : index
    %c0_10 = arith.constant 0 : index
    %10 = vector.load %arg5[%c0_9, %c0_10] : memref<1x128xf32, #tpu.memory_space<vmem>>, vector<1x128xf32>
    %11 = vector.broadcast %10 : vector<1x128xf32> to vector<16x128xf32>
    %12 = arith.addf %9, %11 : vector<16x128xf32>
    %13 = arith.negf %12 : vector<16x128xf32>
    %14 = math.exp %13 : vector<16x128xf32>
    %cst_11 = arith.constant 1.000000e+00 : f32
    %15 = vector.broadcast %cst_11 : f32 to vector<16x128xf32>
    %16 = arith.addf %15, %14 : vector<16x128xf32>
    %17 = arith.divf %15, %16 : vector<16x128xf32>
    %c0_12 = arith.constant 0 : index
    %c0_13 = arith.constant 0 : index
    %18 = vector.load %arg6[%c0_12, %c0_13] : memref<16x128xf32, #tpu.memory_space<vmem>>, vector<16x128xf32>
    tpu.vector_store %arg6[%c0_12, %c0_13], %17 {strides = array<i32>} : memref<16x128xf32, #tpu.memory_space<vmem>>, vector<16x128xf32>,
    return
  }
  func.func @transform_0(%arg0: i32) -> (i32, i32) {
    %c0_i32 = arith.constant 0 : i32
    %c0_i32_0 = arith.constant 0 : i32
    return %arg0, %c0_i32 : i32, i32
  }
  func.func @transform_1(%arg0: i32) -> (i32, i32) {
    %c0_i32 = arith.constant 0 : i32
    %c0_i32_0 = arith.constant 0 : i32
    %c0_i32_1 = arith.constant 0 : i32
    return %c0_i32, %c0_i32_0 : i32, i32
  }
  func.func @transform_2(%arg0: i32) -> (i32, i32) {
    %c0_i32 = arith.constant 0 : i32
    %c0_i32_0 = arith.constant 0 : i32
    %c0_i32_1 = arith.constant 0 : i32
    return %c0_i32, %c0_i32_0 : i32, i32
  }
  func.func @transform_3(%arg0: i32) -> (i32, i32) {
    %c0_i32 = arith.constant 0 : i32
    %c0_i32_0 = arith.constant 0 : i32
    %c0_i32_1 = arith.constant 0 : i32
    return %c0_i32, %c0_i32_0 : i32, i32
  }
  func.func @transform_4(%arg0: i32) -> (i32, i32) {
    %c0_i32 = arith.constant 0 : i32
    %c0_i32_0 = arith.constant 0 : i32
    %c0_i32_1 = arith.constant 0 : i32
    return %c0_i32, %c0_i32_0 : i32, i32
  }
  func.func @transform_5(%arg0: i32) -> (i32, i32) {
    %c0_i32 = arith.constant 0 : i32
    %c0_i32_0 = arith.constant 0 : i32
    return %arg0, %c0_i32 : i32, i32
  }
}

</mosaic_0001>

<bundles_post_ra>
// kernel: _simple_nn_forward.1
= control target key start
LH: loop header
LB: loop body
LE: loop exit
PB: predicated region body
PF: predicated region fallthrough
CT: control target
= control target key end

     0   :  { %10 = vsyncpa [#allocation3], 0  ;;  %s492_s0 = inlined_call_operand.vmem [shape: f32[16,128], index: 0, kind: input, shape index: {}]   ;;  %s493_s1 = inlined_call_operand.hbm [shape: f32[128,128], index: 1, kind: input, shape index: {}]   ;;  %s494_s2 = inlined_call_operand.vmem [shape: f32[1,128], index: 2, kind: input, shape index: {}]   ;;  %s495_s3 = inlined_call_operand.hbm [shape: f32[128,128], index: 3, kind: input, shape index: {}]   ;;  %s496_s4 = inlined_call_operand.vmem [shape: f32[1,128], index: 4, kind: input, shape index: {}]   ;;  %s497_s5 = inlined_call_operand.vmem [shape: f32[16,128], index: 5, kind: output, shape index: {}]  }
   0x1   :  { %11 = vsyncpa [#allocation5], 0  ;;  %s434_s18 = smov [#allocation2]  }
   0x2   :  { %s19_s19 = sshll.u32 %s434_s18, 4  ;;  %s20_s19 = int_to_ptr.vmem [resolvable:$true] %s19_s19 }
   0x3   :  { %s398_s20 = scalar_lea.vmem %s20_s19, 2048  ;;  %p403_p1 = scmp.lt.s32.totalorder %s20_s19, %s20_s19 }
   0x4   :  { %p399_p0 = scmp.ne.s32.totalorder %s20_s19, %s398_s20  ;;  %p404_p2 = scmp.lt.s32.totalorder %s398_s20, %s398_s20 }
   0x6   :  { %p405_p3 = por %p404_p2, %p403_p1 }
   0x8   :  { %p406_p4 = pnand %p405_p3, %p399_p0 }
   0xa   :  { %409 = shalt.err (!%p406_p4)
}
   0xb   :  { %s435_s21 = smov 128   ;;  %s436_s22 = smov 8  }
   0xc   :  { %25 = dma.hbm_to_vmem [thread:$0]  %s493_s1, 2048, %s20_s19, [#allocation3], %s435_s21, %s435_s21, %s436_s22  }
   0xd   :  { %s437_s25 = smov [#allocation4]  }
   0xe   :  { %s33_s26 = sshll.u32 %s437_s25, 4  ;;  %s34_s26 = int_to_ptr.vmem [resolvable:$true] %s33_s26 }
   0xf   :  { %s418_s27 = scalar_lea.vmem %s34_s26, 2048  ;;  %p423_p6 = scmp.lt.s32.totalorder %s34_s26, %s34_s26 }
  0x10   :  { %p419_p5 = scmp.ne.s32.totalorder %s34_s26, %s418_s27  ;;  %p424_p7 = scmp.lt.s32.totalorder %s418_s27, %s418_s27 }
  0x12   :  { %p425_p8 = por %p424_p7, %p423_p6 }
  0x14   :  { %p426_p9 = pnand %p425_p8, %p419_p5 }
  0x16   :  { %429 = shalt.err (!%p426_p9)
}
  0x17   :  { %39 = dma.hbm_to_vmem [thread:$0]  %s495_s3, 2048, %s34_s26, [#allocation5], %s435_s21, %s435_s21, %s436_s22  }
  0x18   :  { %430 = dma.done.wait [#allocation3], 2048  }
  0x19   :  { %431 = vsyncadd [#allocation3], 4294965248 }
  0x1a   :  { %432 = dma.done.wait [#allocation5], 2048  }
  0x1b   :  { %433 = vsyncadd [#allocation5], 4294965248  ;;  %v65_v0 = vld [vmem:[#allocation2 + $0x78] sm:$0xff]  ;;  %v64_v1 = vld [vmem:[#allocation2 + $0x70] sm:$0xff] }
  0x1c   :  { %308 = vmatprep.subr.mxu0 %v65_v0  ;;  %v63_v2 = vld [vmem:[#allocation2 + $0x68] sm:$0xff]  ;;  %v62_v3 = vld [vmem:[#allocation2 + $0x60] sm:$0xff]  ;;  %v61_v5 = vld [vmem:[#allocation2 + $0x58] sm:$0xff] }
  0x1d   :  { %309 = vmatpush3.msra.mxu0 %v65_v0  ;;  %v48_v4 = vld [vmem:[%s492_s0] sm:$0xff]  ;;  %v165_v6 = vld [vmem:[#allocation4 + $0x78] sm:$0xff]  ;;  %v164_v7 = vld [vmem:[#allocation4 + $0x70] sm:$0xff] }
  0x1e   :  { %310 = vmatprep.subr.mxu0 %v64_v1  ;;  %340 = vmatprep.mubr.f32.mxu0 %v48_v4  ;;  %v60_v8 = vld [vmem:[#allocation2 + $0x50] sm:$0xff]  ;;  %v163_v9 = vld [vmem:[#allocation4 + $0x68] sm:$0xff]  ;;  %v162_v11 = vld [vmem:[#allocation4 + $0x60] sm:$0xff] }
  0x1f   :  { %311 = vmatpush3.msra.mxu0 %v64_v1  ;;  %343 = vmatprep.subr.mxu1 %v165_v6  ;;  %v59_v10 = vld [vmem:[#allocation2 + $0x48] sm:$0xff]  ;;  %v58_v12 = vld [vmem:[#allocation2 + $0x40] sm:$0xff]  ;;  %v161_v13 = vld [vmem:[#allocation4 + $0x58] sm:$0xff] }
  0x20   :  { %312 = vmatprep.subr.mxu0 %v63_v2  ;;  %344 = vmatpush3.msra.mxu1 %v165_v6  ;;  %v57_v14 = vld [vmem:[#allocation2 + $0x38] sm:$0xff]  ;;  %v160_v15 = vld [vmem:[#allocation4 + $0x50] sm:$0xff]  ;;  %v159_v17 = vld [vmem:[#allocation4 + $0x48] sm:$0xff] }
  0x21   :  { %313 = vmatpush3.msra.mxu0 %v63_v2  ;;  %345 = vmatprep.subr.mxu1 %v164_v7  ;;  %v56_v16 = vld [vmem:[#allocation2 + $0x30] sm:$0xff]  ;;  %v55_v18 = vld [vmem:[#allocation2 + $0x28] sm:$0xff]  ;;  %v158_v19 = vld [vmem:[#allocation4 + $0x40] sm:$0xff] }
  0x22   :  { %314 = vmatprep.subr.mxu0 %v62_v3  ;;  %346 = vmatpush3.msra.mxu1 %v164_v7  ;;  %v54_v20 = vld [vmem:[#allocation2 + $0x20] sm:$0xff]  ;;  %v157_v21 = vld [vmem:[#allocation4 + $0x38] sm:$0xff]  ;;  %v156_v23 = vld [vmem:[#allocation4 + $0x30] sm:$0xff] }
  0x23   :  { %315 = vmatpush3.msra.mxu0 %v62_v3  ;;  %347 = vmatprep.subr.mxu1 %v163_v9  ;;  %v53_v22 = vld [vmem:[#allocation2 + $0x18] sm:$0xff]  ;;  %v52_v24 = vld [vmem:[#allocation2 + $0x10] sm:$0xff]  ;;  %v155_v25 = vld [vmem:[#allocation4 + $0x28] sm:$0xff] }
  0x24   :  { %316 = vmatprep.subr.mxu0 %v61_v5  ;;  %348 = vmatpush3.msra.mxu1 %v163_v9  ;;  %v51_v26 = vld [vmem:[#allocation2 + $0x8] sm:$0xff]  ;;  %v154_v27 = vld [vmem:[#allocation4 + $0x20] sm:$0xff]  ;;  %v153_v30 = vld [vmem:[#allocation4 + $0x18] sm:$0xff] }
  0x25   :  { %317 = vmatpush3.msra.mxu0 %v61_v5  ;;  %349 = vmatprep.subr.mxu1 %v162_v11  ;;  %v50_v28 = vld [vmem:[#allocation2] sm:$0xff]  ;;  %v49_v29 = vld [vmem:[%s492_s0 + $0x8] sm:$0xff]  ;;  %v152_v31 = vld [vmem:[#allocation4 + $0x10] sm:$0xff] }
  0x26   :  { %318 = vmatprep.subr.mxu0 %v60_v8  ;;  %350 = vmatpush3.msra.mxu1 %v162_v11  ;;  %v151_v32 = vld [vmem:[#allocation4 + $0x8] sm:$0xff]  ;;  %v150_v33 = vld [vmem:[#allocation4] sm:$0xff] }
  0x27   :  { %319 = vmatpush3.msra.mxu0 %v60_v8  ;;  %351 = vmatprep.subr.mxu1 %v161_v13  ;;  %v268_v34 = vld [vmem:[%s494_s2] ss:$0 sm:$0xff] }
  0x28   :  { %320 = vmatprep.subr.mxu0 %v59_v10  ;;  %352 = vmatpush3.msra.mxu1 %v161_v13  ;;  %v269_v41 = vld [vmem:[%s496_s4] ss:$0 sm:$0xff] }
  0x29   :  { %321 = vmatpush3.msra.mxu0 %v59_v10  ;;  %353 = vmatprep.subr.mxu1 %v160_v15 }
  0x2a   :  { %322 = vmatprep.subr.mxu0 %v58_v12  ;;  %354 = vmatpush3.msra.mxu1 %v160_v15 }
  0x2b   :  { %323 = vmatpush3.msra.mxu0 %v58_v12  ;;  %355 = vmatprep.subr.mxu1 %v159_v17 }
  0x2c   :  { %324 = vmatprep.subr.mxu0 %v57_v14  ;;  %356 = vmatpush3.msra.mxu1 %v159_v17 }
  0x2d   :  { %325 = vmatpush3.msra.mxu0 %v57_v14  ;;  %357 = vmatprep.subr.mxu1 %v158_v19 }
  0x2e   :  { %326 = vmatprep.subr.mxu0 %v56_v16  ;;  %358 = vmatpush3.msra.mxu1 %v158_v19 }
  0x2f   :  { %327 = vmatpush3.msra.mxu0 %v56_v16  ;;  %359 = vmatprep.subr.mxu1 %v157_v21 }
  0x30   :  { %328 = vmatprep.subr.mxu0 %v55_v18  ;;  %360 = vmatpush3.msra.mxu1 %v157_v21 }
  0x31   :  { %329 = vmatpush3.msra.mxu0 %v55_v18  ;;  %361 = vmatprep.subr.mxu1 %v156_v23 }
  0x32   :  { %330 = vmatprep.subr.mxu0 %v54_v20  ;;  %362 = vmatpush3.msra.mxu1 %v156_v23 }
  0x33   :  { %331 = vmatpush3.msra.mxu0 %v54_v20  ;;  %363 = vmatprep.subr.mxu1 %v155_v25 }
  0x34   :  { %332 = vmatprep.subr.mxu0 %v53_v22  ;;  %364 = vmatpush3.msra.mxu1 %v155_v25 }
  0x35   :  { %333 = vmatpush3.msra.mxu0 %v53_v22  ;;  %365 = vmatprep.subr.mxu1 %v154_v27 }
  0x36   :  { %334 = vmatprep.subr.mxu0 %v52_v24  ;;  %366 = vmatpush3.msra.mxu1 %v154_v27 }
  0x37   :  { %335 = vmatpush3.msra.mxu0 %v52_v24  ;;  %367 = vmatprep.subr.mxu1 %v153_v30 }
  0x38   :  { %336 = vmatprep.subr.mxu0 %v51_v26  ;;  %368 = vmatpush3.msra.mxu1 %v153_v30 }
  0x39   :  { %337 = vmatpush3.msra.mxu0 %v51_v26  ;;  %369 = vmatprep.subr.mxu1 %v152_v31 }
  0x3a   :  { %338 = vmatprep.subr.mxu0 %v50_v28  ;;  %370 = vmatpush3.msra.mxu1 %v152_v31 }
  0x3b   :  { %339 = vmatpush3.msra.mxu0 %v50_v28  ;;  %371 = vmatprep.subr.mxu1 %v151_v32 }
  0x3c   :  { %341 = vmatmul.mubr.f32.vlgmr.msra.gmra.mxu0 %v49_v29  ;;  %372 = vmatpush3.msra.mxu1 %v151_v32 }
  0x3d   :  { %373 = vmatprep.subr.mxu1 %v150_v33 }
  0x3e   :  { %374 = vmatpush3.msra.mxu1 %v150_v33 }
  0xfc   :  { %v342_v35 = vpop.f32.mrf.mxu0 }
  0xfd   :  { %v145_v36 = vadd.f32 %v342_v35, %v268_v34 }
  0xfe   :  { %v139_v37 = vpop.f32.mrf.mxu0 }
  0xff   :  { %v140_v38 = vadd.f32 %v268_v34, %v139_v37  ;;  %v149_v40 = vmax.f32 %v145_v36, 0.0 }
 0x101   :  { %v148_v39 = vmax.f32 %v140_v38, 0.0 }
 0x103   :  { %375 = vmatprep.mubr.f32.mxu1 %v148_v39 }
 0x104   :  { %376 = vmatmul.mubr.f32.vlgmr.msra.gmra.mxu1 %v149_v40 }
 0x1c4   :  { %v377_v42 = vpop.f32.mrf.mxu1 }
 0x1c5   :  { %v245_v43 = vadd.f32 %v377_v42, %v269_v41 }
 0x1c6   :  { %v239_v44 = vpop.f32.mrf.mxu1 }
 0x1c7   :  { %v271_v45 = vmul.f32 -1.442695, %v245_v43  ;;  %v240_v46 = vadd.f32 %v269_v41, %v239_v44 }
 0x1c9   :  { %382 = vpow2.f32 %v271_v45  ;;  %v270_v47 = vmul.f32 -1.442695, %v240_v46 }
 0x1cb   :  { %384 = vpow2.f32 %v270_v47 }
 0x1d6   :  { %v383_v48 = vpop.eup %382 }
 0x1d7   :  { %v255_v49 = vadd.f32 1.0, %v383_v48 }
 0x1d8   :  { %v385_v50 = vpop.eup %384 }
 0x1d9   :  { %386 = vrcp.f32 %v255_v49  ;;  %v254_v51 = vadd.f32 1.0, %v385_v50 }
 0x1db   :  { %388 = vrcp.f32 %v254_v51 }
 0x1e6   :  { %v387_v52 = vpop.eup %386 }
 0x1e7   :  { %261 = vst [vmem:[%s497_s5 + $0x8] sm:$0xff] %v387_v52 }
 0x1e8   :  { %v389_v53 = vpop.eup %388 }
 0x1e9   :  { %260 = vst [vmem:[%s497_s5] sm:$0xff] %v389_v53 }
 0x1ea   :  { %266 = vsyncpa [#allocation3], 1 }
 0x1eb   :  { %267 = vsyncpa [#allocation5], 1 }

</bundles_post_ra>
